<compile_context>
chip_gen: v7x
topology: tpu7x:2x2x1
jax: 0.10.0
libtpu: 0.0.40
codegen_flags: <defaults>
</compile_context>

<pallas_src>
import jax
import jax.numpy as jnp
from jax.experimental import pallas as pl
from jax.experimental.pallas import tpu as pltpu


_MAX_TILE_ROWS = 4096  # 4096x128 f32 = 2 MiB/tile; double-buffered x 2 inputs = 8 MiB VMEM.


def _round_up(x, m):
    return ((x + m - 1) // m) * m


# ----------------------------------------------------------------------------
# Fused kernel: streaming sum((w - w0)^2) over the param slab, with the
# cross-entropy + final combine (loss = ce + alpha * sp) in the last-step epilogue.
# ----------------------------------------------------------------------------
def _l2sp_kernel(alpha_ref, labels_ref, logits_ref, wt_ref, ws_ref, loss_ref, acc_ref):
    i = pl.program_id(0)

    @pl.when(i == 0)
    def _():
        acc_ref[...] = jnp.zeros_like(acc_ref)

    # Streaming SP-regularization accumulation: elementwise VPU-only work folded
    # into a resident (8,128) f32 accumulator (no per-step scalar/XLU chain).
    d = wt_ref[...].astype(jnp.float32) - ws_ref[...].astype(jnp.float32)
    dd = d * d
    acc_ref[...] += jnp.sum(dd.reshape(-1, 8, 128), axis=0)

    @pl.when(i == pl.num_programs(0) - 1)
    def _():
        # Cross-entropy (mean reduction, integer labels) fused into the epilogue.
        logits = logits_ref[...].astype(jnp.float32)            # (B, C)
        b, c = logits.shape
        m = jnp.max(logits, axis=-1, keepdims=True)
        shifted = logits - m
        lse = jnp.log(jnp.sum(jnp.exp(shifted), axis=-1, keepdims=True))
        labels = labels_ref[...]                                 # (B, 1) int32
        col = jax.lax.broadcasted_iota(jnp.int32, (b, c), 1)
        picked = jnp.sum(jnp.where(col == labels, shifted - lse, 0.0),
                         axis=-1, keepdims=True)                 # (B, 1)
        ce = -jnp.sum(picked) / jnp.float32(b)

        sp = jnp.sum(acc_ref[...])                               # single final reduce
        loss_ref[0, 0] = ce + alpha_ref[0, 0] * sp


# ----------------------------------------------------------------------------
# Slab construction (host/wrapper side)
# ----------------------------------------------------------------------------
def _slab_geometry(n_elems, dtype):
    itemsize = jnp.dtype(dtype).itemsize
    pack = max(8, 32 // itemsize)              # sublane packing: f32 -> 8, bf16 -> 16, int8 -> 32
    rows_needed = max(1, -(-n_elems // 128))
    tile_rows = min(_MAX_TILE_ROWS, _round_up(rows_needed, pack))
    total_rows = _round_up(rows_needed, tile_rows)
    return tile_rows, total_rows


def make_param_slab(params, total_rows, dtype):
    """Flatten a parameter tree into a zero-padded, lane-dense [total_rows, 128] slab.

    The source (w0) slab is constant during fine-tuning: build it once and reuse it
    across training steps instead of re-concatenating every call.
    """
    leaves = jax.tree_util.tree_leaves(params)
    flat = jnp.concatenate([l.reshape(-1).astype(dtype) for l in leaves])
    flat = jnp.pad(flat, (0, total_rows * 128 - flat.shape[0]))
    return flat.reshape(total_rows, 128)


def l2sp_loss_from_slabs(logits, labels, target_slab, source_slab, alpha, *, tile_rows):
    B, C = logits.shape
    assert target_slab.shape == source_slab.shape
    total_rows = target_slab.shape[0]
    assert total_rows % tile_rows == 0 and tile_rows % 8 == 0
    grid = (total_rows // tile_rows,)

    labels2d = labels.astype(jnp.int32).reshape(B, 1)
    alpha2d = jnp.full((1, 1), alpha, dtype=jnp.float32)

    slab_bytes = int(target_slab.size) * jnp.dtype(target_slab.dtype).itemsize
    cost = pl.CostEstimate(
        flops=3 * int(target_slab.size) + 6 * B * C,
        transcendentals=B * C,
        bytes_accessed=2 * slab_bytes + (B * C + B) * 4,
    )

    loss = pl.pallas_call(
        _l2sp_kernel,
        out_shape=jax.ShapeDtypeStruct((1, 1), jnp.float32),
        grid=grid,
        in_specs=[
            pl.BlockSpec(memory_space=pltpu.MemorySpace.SMEM),     # alpha scalar, resident
            pl.BlockSpec((B, 1), lambda i: (0, 0)),                # labels, resident
            pl.BlockSpec((B, C), lambda i: (0, 0)),                # logits, resident
            pl.BlockSpec((tile_rows, 128), lambda i: (i, 0)),      # target param tile (streamed)
            pl.BlockSpec((tile_rows, 128), lambda i: (i, 0)),      # source param tile (streamed)
        ],
        out_specs=pl.BlockSpec(memory_space=pltpu.MemorySpace.SMEM),
        scratch_shapes=[pltpu.VMEM((8, 128), jnp.float32)],        # vector accumulator
        compiler_params=pltpu.CompilerParams(dimension_semantics=("arbitrary",)),
        cost_estimate=cost,
    )(alpha2d, labels2d, logits, target_slab, source_slab)
    return loss[0, 0]


def l2sp_loss(logits, labels, target_params, source_params, alpha=0.5):
    """loss = cross_entropy(logits, labels) + alpha * sum_p ||p_target - p_source||^2"""
    t_leaves = jax.tree_util.tree_leaves(target_params)
    dtype = jnp.result_type(*t_leaves)                 # keep native width (e.g. bf16 stays bf16)
    n = sum(int(l.size) for l in t_leaves)
    tile_rows, total_rows = _slab_geometry(n, dtype)
    wt = make_param_slab(target_params, total_rows, dtype)
    ws = make_param_slab(source_params, total_rows, dtype)  # w0 is frozen: cache in training loops
    return l2sp_loss_from_slabs(logits, labels, wt, ws, alpha, tile_rows=tile_rows)


# ----------------------------------------------------------------------------
# Pure-JAX reference (for validation)
# ----------------------------------------------------------------------------
def _ref_loss(logits, labels, target_params, source_params, alpha):
    logp = jax.nn.log_softmax(logits.astype(jnp.float32), axis=-1)
    ce = -jnp.mean(jnp.take_along_axis(logp, labels[:, None].astype(jnp.int32), axis=-1))
    sp = 0.0
    for t, s in zip(jax.tree_util.tree_leaves(target_params),
                    jax.tree_util.tree_leaves(source_params)):
        d = t.astype(jnp.float32) - s.astype(jnp.float32)
        sp = sp + jnp.sum(d * d)
    return ce + alpha * sp


if __name__ == "__main__":
    key = jax.random.PRNGKey(0)
    kl, ky, *kp = jax.random.split(key, 10)

    B, C = 8, 32
    logits = jax.random.normal(kl, (B, C), dtype=jnp.float32)
    labels = jax.random.randint(ky, (B,), 0, C, dtype=jnp.int32)

    # Synthetic image-encoder parameters (PyTorch-style shapes: conv weight OIHW).
    param_shapes = {
        "conv1.weight": (8, 3, 3, 3),
        "conv1.bias": (8,),
        "fc.weight": (16, 128),
        "fc.bias": (16,),
    }
    source_params = {}
    target_params = {}
    for i, (name, shp) in enumerate(sorted(param_shapes.items())):
        ks, kt = jax.random.split(kp[i])
        w0 = 0.1 * jax.random.normal(ks, shp, dtype=jnp.float32)
        source_params[name] = w0                                     # pretrained (starting point)
        target_params[name] = w0 + 0.05 * jax.random.normal(kt, shp, dtype=jnp.float32)

    alpha = 0.5
    loss = l2sp_loss(logits, labels, target_params, source_params, alpha=alpha)
    loss = jax.block_until_ready(loss)

    ref = _ref_loss(logits, labels, target_params, source_params, alpha)
    assert jnp.allclose(loss, ref, rtol=1e-5, atol=1e-5), (loss, ref)
    print("KERNEL_OK")
</pallas_src>

<mosaic_0001>
module attributes {stable_mosaic.version = 11 : i64} {
  func.func @_l2sp_kernel(%arg0: i32, %arg1: memref<1x1xf32, #tpu.memory_space<smem>>, %arg2: memref<8x1xi32, #tpu.memory_space<vmem>>, %arg3: memref<8x32xf32, #tpu.memory_space<vmem>>, %arg4: memref<24x128xf32, #tpu.memory_space<vmem>>, %arg5: memref<24x128xf32, #tpu.memory_space<vmem>>, %arg6: memref<1x1xf32, #tpu.memory_space<smem>>, %arg7: memref<8x128xf32, #tpu.memory_space<vmem>>) attributes {dimension_semantics = [#tpu.dimension_semantics<arbitrary>], iteration_bounds = array<i64: 1>, scalar_prefetch = 0 : i64, scratch_operands = 1 : i64, tpu.core_type = #tpu.core_type<tc>, window_params = [{transform_indices = @transform_0, window_bounds = array<i64: 1, 1>}, {pipeline_mode = #tpu.pipeline_mode<synchronous>, transform_indices = @transform_1, window_bounds = array<i64: 8, 1>}, {pipeline_mode = #tpu.pipeline_mode<synchronous>, transform_indices = @transform_2, window_bounds = array<i64: 8, 32>}, {transform_indices = @transform_3, window_bounds = array<i64: 24, 128>}, {transform_indices = @transform_4, window_bounds = array<i64: 24, 128>}, {transform_indices = @transform_5, window_bounds = array<i64: 1, 1>}]} {
    %c0_i32 = arith.constant 0 : i32
    %0 = arith.cmpi eq, %arg0, %c0_i32 : i32
    %1 = arith.extui %0 : i1 to i32
    %c0_i32_0 = arith.constant 0 : i32
    %2 = arith.cmpi ne, %1, %c0_i32_0 : i32
    scf.if %2 {
      %cst_10 = arith.constant 0.000000e+00 : f32
      %15 = vector.broadcast %cst_10 : f32 to vector<8x128xf32>
      %c0_11 = arith.constant 0 : index
      %c0_12 = arith.constant 0 : index
      %16 = vector.load %arg7[%c0_11, %c0_12] : memref<8x128xf32, #tpu.memory_space<vmem>>, vector<8x128xf32>
      tpu.vector_store %arg7[%c0_11, %c0_12], %15 {strides = array<i32>} : memref<8x128xf32, #tpu.memory_space<vmem>>, vector<8x128xf32>,
    } else {
    }
    %c0 = arith.constant 0 : index
    %c0_1 = arith.constant 0 : index
    %3 = vector.load %arg4[%c0, %c0_1] : memref<24x128xf32, #tpu.memory_space<vmem>>, vector<24x128xf32>
    %c0_2 = arith.constant 0 : index
    %c0_3 = arith.constant 0 : index
    %4 = vector.load %arg5[%c0_2, %c0_3] : memref<24x128xf32, #tpu.memory_space<vmem>>, vector<24x128xf32>
    %5 = arith.subf %3, %4 : vector<24x128xf32>
    %6 = arith.mulf %5, %5 : vector<24x128xf32>
    %c0_4 = arith.constant 0 : index
    %c0_5 = arith.constant 0 : index
    %7 = vector.load %arg7[%c0_4, %c0_5] : memref<8x128xf32, #tpu.memory_space<vmem>>, vector<8x128xf32>
    %8 = vector.shape_cast %6 : vector<24x128xf32> to vector<3x8x128xf32>
    %cst = arith.constant dense<0.000000e+00> : vector<8x128xf32>
    %9 = vector.multi_reduction <add>, %8, %cst [0] : vector<3x8x128xf32> to vector<8x128xf32>
    %10 = arith.addf %7, %9 : vector<8x128xf32>
    %c0_6 = arith.constant 0 : index
    %c0_7 = arith.constant 0 : index
    %11 = vector.load %arg7[%c0_6, %c0_7] : memref<8x128xf32, #tpu.memory_space<vmem>>, vector<8x128xf32>
    tpu.vector_store %arg7[%c0_6, %c0_7], %10 {strides = array<i32>} : memref<8x128xf32, #tpu.memory_space<vmem>>, vector<8x128xf32>,
    %c0_i32_8 = arith.constant 0 : i32
    %12 = arith.cmpi eq, %arg0, %c0_i32_8 : i32
    %13 = arith.extui %12 : i1 to i32
    %c0_i32_9 = arith.constant 0 : i32
    %14 = arith.cmpi ne, %13, %c0_i32_9 : i32
    scf.if %14 {
      %c0_10 = arith.constant 0 : index
      %c0_11 = arith.constant 0 : index
      %15 = vector.load %arg3[%c0_10, %c0_11] : memref<8x32xf32, #tpu.memory_space<vmem>>, vector<8x32xf32>
      %cst_12 = arith.constant dense<0xFF800000> : vector<8xf32>
      %16 = vector.multi_reduction <maximumf>, %15, %cst_12 [1] : vector<8x32xf32> to vector<8xf32>
      %17 = vector.shape_cast %16 : vector<8xf32> to vector<8x1xf32>
      %18 = vector.broadcast %17 : vector<8x1xf32> to vector<8x32xf32>
      %19 = arith.subf %15, %18 : vector<8x32xf32>
      %20 = math.exp %19 : vector<8x32xf32>
      %cst_13 = arith.constant dense<0.000000e+00> : vector<8xf32>
      %21 = vector.multi_reduction <add>, %20, %cst_13 [1] : vector<8x32xf32> to vector<8xf32>
      %22 = vector.shape_cast %21 : vector<8xf32> to vector<8x1xf32>
      %23 = math.log %22 : vector<8x1xf32>
      %c0_14 = arith.constant 0 : index
      %c0_15 = arith.constant 0 : index
      %24 = vector.load %arg2[%c0_14, %c0_15] : memref<8x1xi32, #tpu.memory_space<vmem>>, vector<8x1xi32>
      %25 = tpu.iota {dimensions = array<i32: 1>} : vector<8x32xi32>
      %26 = vector.broadcast %24 : vector<8x1xi32> to vector<8x32xi32>
      %27 = arith.cmpi eq, %25, %26 : vector<8x32xi32>
      %28 = vector.broadcast %23 : vector<8x1xf32> to vector<8x32xf32>
      %29 = arith.subf %19, %28 : vector<8x32xf32>
      %cst_16 = arith.constant 0.000000e+00 : f32
      %30 = vector.broadcast %cst_16 : f32 to vector<8x32xf32>
      %31 = arith.select %27, %29, %30 : vector<8x32xi1>, vector<8x32xf32>
      %cst_17 = arith.constant dense<0.000000e+00> : vector<8xf32>
      %32 = vector.multi_reduction <add>, %31, %cst_17 [1] : vector<8x32xf32> to vector<8xf32>
      %33 = vector.shape_cast %32 : vector<8xf32> to vector<8x1xf32>
      %34 = vector.shape_cast %33 : vector<8x1xf32> to vector<1x8x1xf32>
      %cst_18 = arith.constant dense<0.000000e+00> : vector<1xf32>
      %35 = vector.multi_reduction <add>, %34, %cst_18 [1, 2] : vector<1x8x1xf32> to vector<1xf32>
      %36 = vector.shape_cast %35 : vector<1xf32> to vector<1x1x1xf32>
      %37 = vector.extract %36[0, 0, 0] : f32 from vector<1x1x1xf32>
      %cst_19 = arith.constant 0.000000e+00 : f32
      %38 = arith.subf %cst_19, %37 : f32
      %cst_20 = arith.constant 8.000000e+00 : f32
      %39 = arith.divf %38, %cst_20 : f32
      %c0_21 = arith.constant 0 : index
      %c0_22 = arith.constant 0 : index
      %40 = vector.load %arg7[%c0_21, %c0_22] : memref<8x128xf32, #tpu.memory_space<vmem>>, vector<8x128xf32>
      %41 = vector.shape_cast %40 : vector<8x128xf32> to vector<1x8x128xf32>
      %cst_23 = arith.constant dense<0.000000e+00> : vector<1xf32>
      %42 = vector.multi_reduction <add>, %41, %cst_23 [1, 2] : vector<1x8x128xf32> to vector<1xf32>
      %43 = vector.shape_cast %42 : vector<1xf32> to vector<1x1x1xf32>
      %44 = vector.extract %43[0, 0, 0] : f32 from vector<1x1x1xf32>
      %c0_24 = arith.constant 0 : index
      %c0_25 = arith.constant 0 : index
      %45 = memref.load %arg1[%c0_24, %c0_25] : memref<1x1xf32, #tpu.memory_space<smem>>
      %46 = arith.mulf %45, %44 : f32
      %47 = arith.addf %39, %46 : f32
      %c0_26 = arith.constant 0 : index
      %c0_27 = arith.constant 0 : index
      %48 = memref.load %arg6[%c0_26, %c0_27] : memref<1x1xf32, #tpu.memory_space<smem>>
      memref.store %47, %arg6[%c0_26, %c0_27] : memref<1x1xf32, #tpu.memory_space<smem>>
    } else {
    }
    return
  }
  func.func @transform_0(%arg0: i32) -> (i32, i32) {
    %c0_i32 = arith.constant 0 : i32
    %c0_i32_0 = arith.constant 0 : i32
    %c0_i32_1 = arith.constant 0 : i32
    return %c0_i32, %c0_i32_0 : i32, i32
  }
  func.func @transform_1(%arg0: i32) -> (i32, i32) {
    %c0_i32 = arith.constant 0 : i32
    %c0_i32_0 = arith.constant 0 : i32
    %c0_i32_1 = arith.constant 0 : i32
    return %c0_i32, %c0_i32_0 : i32, i32
  }
  func.func @transform_2(%arg0: i32) -> (i32, i32) {
    %c0_i32 = arith.constant 0 : i32
    %c0_i32_0 = arith.constant 0 : i32
    %c0_i32_1 = arith.constant 0 : i32
    return %c0_i32, %c0_i32_0 : i32, i32
  }
  func.func @transform_3(%arg0: i32) -> (i32, i32) {
    %c0_i32 = arith.constant 0 : i32
    %c0_i32_0 = arith.constant 0 : i32
    return %arg0, %c0_i32 : i32, i32
  }
  func.func @transform_4(%arg0: i32) -> (i32, i32) {
    %c0_i32 = arith.constant 0 : i32
    %c0_i32_0 = arith.constant 0 : i32
    return %arg0, %c0_i32 : i32, i32
  }
  func.func @transform_5(%arg0: i32) -> (i32, i32) {
    %c0_i32 = arith.constant 0 : i32
    %c0_i32_0 = arith.constant 0 : i32
    %c0_i32_1 = arith.constant 0 : i32
    return %c0_i32, %c0_i32_0 : i32, i32
  }
}

</mosaic_0001>

<bundles_post_ra>
// kernel: tpu_custom_call.1
= control target key start
LH: loop header
LB: loop body
LE: loop exit
PB: predicated region body
PF: predicated region fallthrough
CT: control target
= control target key end

     0   :  { %11 = vsyncpa [#allocation5], 0  ;;  %s316_s0 = inlined_call_operand.<no memory space> [shape: f32[1,1], index: 0, kind: input, shape index: {}]   ;;  %s317_s1 = inlined_call_operand.vmem [shape: s32[8,1], index: 1, kind: input, shape index: {}]   ;;  %s318_s2 = inlined_call_operand.hbm [shape: f32[8,32], index: 2, kind: input, shape index: {}]   ;;  %s319_s3 = inlined_call_operand.hbm [shape: f32[24,128], index: 3, kind: input, shape index: {}]   ;;  %s320_s4 = inlined_call_operand.vmem [shape: f32[24,128], index: 4, kind: input, shape index: {}]   ;;  %s321_s5 = inlined_call_operand.hbm [shape: f32[1,1], index: 5, kind: output, shape index: {}]  }
   0x1   :  { %12 = vsyncpa [#allocation8], 0 }
   0x2   :  { %13 = vsyncpa [#allocation6], 0  ;;  %s219_s18 = smov [#allocation4]   ;;  %s220_s20 = smov [#allocation7]  }
   0x3   :  { %s24_s19 = sshll.u32 %s219_s18, 4  ;;  %s33_s21 = sshll.u32 %s220_s20, 4  ;;  %s25_s19 = int_to_ptr.vmem [resolvable:$true] %s24_s19  ;;  %s255_s21 = int_to_ptr.vmem [resolvable:$true] %s33_s21 }
   0x4   :  { %s159_s24 = scalar_lea.hbm %s318_s2, 128 }
   0x5   :  { %p160_p0 = scmp.ne.s32.totalorder %s318_s2, %s159_s24  ;;  %p163_p1 = scmp.lt.u32.totalorder %s159_s24, %s318_s2 }
   0x7   :  { %p165_p2 = pnand %p163_p1, %p160_p0 }
   0x9   :  { %168 = shalt.err (!%p165_p2)
}
   0xa   :  { %s169_s29 = scalar_lea.vmem %s25_s19, 128  ;;  %p174_p4 = scmp.lt.s32.totalorder %s25_s19, %s25_s19 }
   0xb   :  { %p170_p3 = scmp.ne.s32.totalorder %s25_s19, %s169_s29  ;;  %p175_p5 = scmp.lt.s32.totalorder %s169_s29, %s169_s29 }
   0xd   :  { %p176_p6 = por %p175_p5, %p174_p4 }
   0xf   :  { %p177_p7 = pnand %p176_p6, %p170_p3 }
  0x11   :  { %180 = shalt.err (!%p177_p7)
}
  0x12   :  { %27 = dma.hbm_to_vmem [thread:$0]  %s318_s2, 128, %s25_s19, [#allocation5]  }
  0x13   :  { %s181_s9 = scalar_lea.hbm %s319_s3, 384 }
  0x14   :  { %p182_p8 = scmp.ne.s32.totalorder %s319_s3, %s181_s9  ;;  %p185_p9 = scmp.lt.u32.totalorder %s181_s9, %s319_s3 }
  0x16   :  { %p187_p10 = pnand %p185_p9, %p182_p8 }
  0x18   :  { %190 = shalt.err (!%p187_p10)
}
  0x19   :  { %s191_s14 = scalar_lea.vmem %s255_s21, 384  ;;  %p196_p12 = scmp.lt.s32.totalorder %s255_s21, %s255_s21 }
  0x1a   :  { %p192_p11 = scmp.ne.s32.totalorder %s255_s21, %s191_s14  ;;  %p197_p13 = scmp.lt.s32.totalorder %s191_s14, %s191_s14 }
  0x1c   :  { %p198_p0 = por %p197_p13, %p196_p12 }
  0x1e   :  { %p199_p1 = pnand %p198_p0, %p192_p11 }
  0x20   :  { %202 = shalt.err (!%p199_p1)
}
  0x21   :  { %s221_s2 = smov 128   ;;  %s222_s15 = smov 8  }
  0x22   :  { %39 = dma.hbm_to_vmem [thread:$0]  %s319_s3, 384, %s255_s21, [#allocation8], %s221_s2, %s221_s2, %s222_s15  }
  0x23   :  { %213 = dma.done.wait [#allocation5], 128  }
  0x24   :  { %214 = vsyncadd [#allocation5], 4294967168 }
  0x25   :  { %215 = dma.done.wait [#allocation8], 384  }
  0x26   :  { %216 = vsyncadd [#allocation8], 4294966912  ;;  %vm74_vm0 = vcmask 261120   ;;  %v73_v0 = vld [vmem:[#allocation4] sm:$0xff]  ;;  %v223_v3 = vmov 0   ;;  %v87_v10 = vlaneseq  ;;  %v53_v18 = vld [vmem:[#allocation7] sm:$0xff] }
  0x27   :  { %v75_v1 = vsel %vm74_vm0, %v73_v0, -inf  ;;  %v86_v2 = vld [vmem:[%s317_s1] sm:$0xff]  ;;  %153 = vset.pattern.permute.xlu1 %v223_v3  ;;  %154 = vset.pattern.permute.xlu0 %v223_v3  ;;  %v54_v19 = vld [vmem:[#allocation7 + $0x8] sm:$0xff]  ;;  %v57_v21 = vld [vmem:[%s320_s4 + $0x8] sm:$0xff]  ;;  %vm98_vm2 = vcmask 7168   ;;  %s203_s8 = scalar_lea.hbm %s321_s5, 16 }
  0x28   :  { %76 = vmax.xlane.f32.xlu0 %v75_v1  ;;  %90 = vperm.xlu1 %153, %v86_v2   ;;  %v88_v11 = vand.u32 127, %v87_v10  ;;  %v56_v20 = vld [vmem:[%s320_s4] sm:$0xff]  ;;  %v60_v23 = vsub.f32 %v54_v19, %v57_v21  ;;  %v55_v24 = vld [vmem:[#allocation7 + $0x10] sm:$0xff]  ;;  %v58_v25 = vld [vmem:[%s320_s4 + $0x10] sm:$0xff]  ;;  %p204_p2 = scmp.ne.s32.totalorder %s321_s5, %s203_s8  ;;  %p207_p3 = scmp.lt.u32.totalorder %s203_s8, %s321_s5 }
  0x29   :  { %v59_v22 = vsub.f32 %v53_v18, %v56_v20  ;;  %v61_v26 = vsub.f32 %v55_v24, %v58_v25 }
  0x2a   :  { %v63_v28 = vmul.f32 %v60_v23, %v60_v23  ;;  %p209_p4 = pnand %p207_p3, %p204_p2 }
  0x2b   :  { %v62_v27 = vmul.f32 %v59_v22, %v59_v22  ;;  %v64_v29 = vmul.f32 %v61_v26, %v61_v26 }
  0x2d   :  { %v66_v30 = vadd.f32 %v63_v28, %v62_v27 }
  0x2f   :  { %v67_v33 = vadd.f32 %v66_v30, %v64_v29 }
  0xa7   :  { %v91_v12 = vpop.permute.xlu1 %90 }
  0xa8   :  { %vm92_vm1 = vcmp.eq.s32.totalorder %v88_v11, %v91_v12 }
  0xb5   :  { %v77_v4 = vpop.xlane.xlu0 %76 }
  0xb6   :  { %v78_v5 = vsub.f32 %v73_v0, %v77_v4 }
  0xb8   :  { %v79_v6 = vmul.f32 1.442695, %v78_v5 }
  0xba   :  { %155 = vpow2.f32 %v79_v6 }
  0xc4   :  { %v156_v7 = vpop.eup %155 }
  0xc5   :  { %v81_v8 = vsel %vm74_vm0, %v156_v7, 0.0 }
  0xc6   :  { %82 = vadd.xlane.f32.xlu0 %v81_v8 }
 0x153   :  { %v83_v9 = vpop.xlane.xlu0 %82 }
 0x154   :  { %157 = vlog2.f32 %v83_v9 }
 0x15e   :  { %v158_v13 = vpop.eup %157 }
 0x15f   :  { %v85_v14 = vmul.f32 0.6931472, %v158_v13 }
 0x161   :  { %v93_v15 = vsub.f32 %v78_v5, %v85_v14 }
 0x163   :  { %v94_v16 = vsel %vm92_vm1, %v93_v15, 0.0 }
 0x164   :  { %v95_v17 = vsel %vm74_vm0, %v94_v16, 0.0 }
 0x165   :  { %96 = vadd.xlane.f32.xlu1 %v95_v17 }
 0x1f2   :  { %v97_v31 = vpop.xlane.xlu1 %96 }
 0x1f3   :  { %v99_v32 = vsel %vm98_vm2, %v97_v31, 0.0 }
 0x1f4   :  { %100 = vadd.xlane.f32.xlu0 %v99_v32 }
 0x1f8   :  { %114 = vadd.xlane.f32.xlu0 %v67_v33 }
 0x281   :  { %v101_v34 = vpop.xlane.xlu0 %100 }
 0x282   :  { %v102_v35 = vrot.slane %v101_v34, 4 }
 0x284   :  { %v103_v36 = vadd.f32 %v102_v35, %v101_v34 }
 0x285   :  { %v115_v37 = vpop.xlane.xlu0 %114 }
 0x286   :  { %v104_v38 = vrot.slane %v103_v36, 2  ;;  %v116_v39 = vrot.slane %v115_v37, 4 }
 0x288   :  { %v117_v40 = vadd.f32 %v116_v39, %v115_v37  ;;  %v105_v41 = vadd.f32 %v104_v38, %v103_v36 }
 0x28a   :  { %v118_v42 = vrot.slane %v117_v40, 2  ;;  %v106_v43 = vrot.slane %v105_v41, 1 }
 0x28c   :  { %v119_v44 = vadd.f32 %v118_v42, %v117_v40  ;;  %v107_v45 = vadd.f32 %v106_v43, %v105_v41 }
 0x28e   :  { %143 = vpush %v107_v45  ;;  %v120_v46 = vrot.slane %v119_v44, 1 }
 0x290   :  { %v121_v47 = vadd.f32 %v120_v46, %v119_v44 }
 0x292   :  { %145 = vpush %v121_v47 }
 0x2bf   :  { %s144_s4 = spop %143 }
 0x2c0   :  { %s109_s24 = ssub.f32 0.0, %s144_s4 }
 0x2c2   :  { %s112_s25 = smul.f32 0.125, %s109_s24 }
 0x2c3   :  { %s146_s26 = spop %145 }
 0x2c4   :  { %s124_s29 = smul.f32 %s146_s26, %s316_s0 }
 0x2c6   :  { %s125_s30 = sadd.f32 %s124_s29, %s112_s25 }
 0x2c8   :  { %127 = sst [smem:[#allocation9]] %s125_s30 }
 0x2c9   :  { %212 = shalt.err (!%p209_p4)
}
 0x2ca   :  { %s224_s13 = smov [#allocation9]  }
 0x2cb   :  { %135 = dma.smem_to_hbm %s224_s13, 16, %s321_s5, [#allocation6]  }
 0x2cc   :  { %217 = dma.done.wait [#allocation6], 16  }
 0x2cd   :  { %218 = vsyncadd [#allocation6], 4294967280 }
 0x2ce   :  { %139 = sfence }
 0x2cf   :  { %140 = vsyncpa [#allocation5], 1 }
 0x2d0   :  { %141 = vsyncpa [#allocation8], 1 }
 0x2d1   :  { %142 = vsyncpa [#allocation6], 1 }

</bundles_post_ra>
